<compile_context>
chip_gen: v7x
topology: tpu7x:2x2x1
jax: 0.10.0
libtpu: 0.0.40
codegen_flags: <defaults>
</compile_context>

<pallas_src>
import functools

import numpy as np
import jax
import jax.numpy as jnp
from jax.experimental import pallas as pl
from jax.experimental.pallas import tpu as pltpu


# --------------------------------------------------------------------------- #
# Kernels
# --------------------------------------------------------------------------- #
def _haar_kernel_merged(wcat_ref, hbig_ref, x_ref, o_ref, *, tb, th, tw):
    """2-matmul Haar analysis; writes one lane-dense quadrant-layout tile.

    wcat_ref : (TW, TW)        width analysis, columns = [low | high], entries +-1
    hbig_ref : (TB*TH, TB*TH)  block-diag height analysis, rows = [low | high], +-0.5
    x_ref    : (TB, TH, TW)    TB images' spatial tile
    o_ref    : (TB, TH, TW)    quadrant layout: [[LL, Yh1], [Yh0, Yh2]] per image
    """
    x2 = x_ref[...].reshape(tb * th, tw)
    xw = jnp.dot(x2, wcat_ref[...], preferred_element_type=jnp.float32)
    y2 = jnp.dot(hbig_ref[...], xw, preferred_element_type=jnp.float32)
    o_ref[...] = y2.reshape(tb, th, tw).astype(o_ref.dtype)


def _haar_kernel_split(wcat_ref, hbig_ref, x_ref,
                       ll_ref, h0_ref, h1_ref, h2_ref, *, tb, th, tw):
    """Same math; four separate lane-dense band outputs (used when TW//2 >= 128)."""
    tho, two = th // 2, tw // 2
    x2 = x_ref[...].reshape(tb * th, tw)
    xw = jnp.dot(x2, wcat_ref[...], preferred_element_type=jnp.float32)
    y2 = jnp.dot(hbig_ref[...], xw, preferred_element_type=jnp.float32)
    y = y2.reshape(tb, th, tw).astype(ll_ref.dtype)
    ll_ref[...] = y[:, :tho, :two]    # low-H,  low-W   -> Yl
    h0_ref[...] = y[:, tho:, :two]    # high-H, low-W   -> Yh[...,0]
    h1_ref[...] = y[:, :tho, two:]    # low-H,  high-W  -> Yh[...,1]
    h2_ref[...] = y[:, tho:, two:]    # high-H, high-W  -> Yh[...,2]


# --------------------------------------------------------------------------- #
# Filter / tiling helpers (deterministic constants, no checkpoint)
# --------------------------------------------------------------------------- #
def _analysis_matrices(tb, th, tw, dtype):
    """Merged Haar analysis matrices with bf16-exact entries (+-1 / +-0.5)."""
    tho, two = th // 2, tw // 2
    wcat = np.zeros((tw, tw), np.float32)
    for k in range(two):
        wcat[2 * k, k] = 1.0          # low-pass  (a + b)
        wcat[2 * k + 1, k] = 1.0
        wcat[2 * k, two + k] = 1.0    # high-pass (a - b)
        wcat[2 * k + 1, two + k] = -1.0
    hcat = np.zeros((th, th), np.float32)
    for g in range(tho):
        hcat[g, 2 * g] = 0.5          # low-pass  0.5*(r0 + r1)
        hcat[g, 2 * g + 1] = 0.5
        hcat[tho + g, 2 * g] = 0.5    # high-pass 0.5*(r0 - r1)
        hcat[tho + g, 2 * g + 1] = -0.5
    # Block-diagonal over the TB images batched per grid step.
    hbig = np.kron(np.eye(tb, dtype=np.float32), hcat)
    return jnp.asarray(wcat, dtype), jnp.asarray(hbig, dtype)


def _pick_spatial_tile(n, sub, cap=256):
    """Largest tile <= cap that is a multiple of `sub` and divides n, else n."""
    if n <= cap:
        return n
    t = (cap // sub) * sub
    while t >= sub:
        if n % t == 0:
            return t
        t -= sub
    return n


def _pick_batch_tile(bc, th, cap=256):
    """Images per grid step; keeps the block-diag Hcat at <= cap rows."""
    if th % 8 != 0:          # keep the in-kernel row-collapse reshape layout-free
        return 1
    best = 1
    for t in range(1, bc + 1):
        if bc % t == 0 and t * th <= cap:
            best = t
    return best


# --------------------------------------------------------------------------- #
# Wrapper
# --------------------------------------------------------------------------- #
def wav_packing(x):
    """Pallas implementation of WavPacking.forward.

    x: (B, C, H, W), H and W even.
    Returns (Yl, Yh0, Yh1, Yh2), each (B, C, H//2, W//2).
    """
    b, c, h, w = x.shape
    assert h % 2 == 0 and w % 2 == 0, "db1/zero J=1 requires even H and W"
    bc = b * c
    ho, wo = h // 2, w // 2

    th = _pick_spatial_tile(h, sub=8)      # second-minor: multiple of 8 (or full H)
    tw = _pick_spatial_tile(w, sub=128)    # minor: multiple of 128 (or full W)
    tb = _pick_batch_tile(bc, th)
    tho, two = th // 2, tw // 2
    nb, nh, nw = bc // tb, h // th, w // tw

    wcat, hbig = _analysis_matrices(tb, th, tw, x.dtype)
    x_flat = x.reshape(bc, h, w)

    filt_w_spec = pl.BlockSpec((tw, tw), lambda i, j, k: (0, 0))
    filt_h_spec = pl.BlockSpec((tb * th, tb * th), lambda i, j, k: (0, 0))
    x_spec = pl.BlockSpec((tb, th, tw), lambda i, j, k: (i, j, k))

    cparams = pltpu.CompilerParams(
        dimension_semantics=("parallel", "parallel", "parallel"),
        vmem_limit_bytes=32 * 1024 * 1024,
    )

    # Four separate band outputs only when they are lane-dense and tile-legal;
    # otherwise emit one quadrant-layout output (single unmasked store per step)
    # and split on the host with static slices.
    split_ok = ((two % 128 == 0 or two == wo) and (tho % 8 == 0 or tho == ho))
    use_split = split_ok and two >= 128

    if use_split:
        kernel = functools.partial(_haar_kernel_split, tb=tb, th=th, tw=tw)
        o_spec = pl.BlockSpec((tb, tho, two), lambda i, j, k: (i, j, k))
        out_shape = tuple(jax.ShapeDtypeStruct((bc, ho, wo), x.dtype)
                          for _ in range(4))
        yl, yh0, yh1, yh2 = pl.pallas_call(
            kernel,
            out_shape=out_shape,
            grid=(nb, nh, nw),
            in_specs=[filt_w_spec, filt_h_spec, x_spec],
            out_specs=(o_spec, o_spec, o_spec, o_spec),
            compiler_params=cparams,
        )(wcat, hbig, x_flat)
    else:
        kernel = functools.partial(_haar_kernel_merged, tb=tb, th=th, tw=tw)
        o_spec = pl.BlockSpec((tb, th, tw), lambda i, j, k: (i, j, k))
        packed = pl.pallas_call(
            kernel,
            out_shape=jax.ShapeDtypeStruct((bc, h, w), x.dtype),
            grid=(nb, nh, nw),
            in_specs=[filt_w_spec, filt_h_spec, x_spec],
            out_specs=o_spec,
            compiler_params=cparams,
        )(wcat, hbig, x_flat)
        # Per-tile quadrant layout -> four bands (cheap static slices on host).
        z = packed.reshape(bc, nh, th, nw, tw)
        yl = z[:, :, :tho, :, :two].reshape(bc, ho, wo)
        yh0 = z[:, :, tho:, :, :two].reshape(bc, ho, wo)
        yh1 = z[:, :, :tho, :, two:].reshape(bc, ho, wo)
        yh2 = z[:, :, tho:, :, two:].reshape(bc, ho, wo)

    shape4 = (b, c, ho, wo)
    return (yl.reshape(shape4), yh0.reshape(shape4),
            yh1.reshape(shape4), yh2.reshape(shape4))


# --------------------------------------------------------------------------- #
# Reference + self-test
# --------------------------------------------------------------------------- #
def _reference(x):
    """Plain-JAX reference (same math as pytorch_wavelets db1/zero, J=1)."""
    a = x[..., 0::2, 0::2]
    b_ = x[..., 0::2, 1::2]
    c_ = x[..., 1::2, 0::2]
    d = x[..., 1::2, 1::2]
    yl = (a + b_ + c_ + d) * 0.5
    yh0 = (a + b_ - c_ - d) * 0.5
    yh1 = (a - b_ + c_ - d) * 0.5
    yh2 = (a - b_ - c_ + d) * 0.5
    return yl, yh0, yh1, yh2


if __name__ == "__main__":
    key = jax.random.PRNGKey(0)
    x = jax.random.normal(key, (2, 4, 16, 16), dtype=jnp.float32)

    outs = jax.jit(wav_packing)(x)
    outs = jax.block_until_ready(outs)

    refs = _reference(x)
    for o, r in zip(outs, refs):
        assert o.shape == r.shape and o.dtype == r.dtype
        np.testing.assert_allclose(np.asarray(o), np.asarray(r),
                                   rtol=1e-5, atol=1e-5)
    print("KERNEL_OK")
</pallas_src>

<mosaic_0001>
module attributes {stable_mosaic.version = 11 : i64} {
  func.func @_haar_kernel_merged(%arg0: i32, %arg1: i32, %arg2: i32, %arg3: memref<16x16xf32, #tpu.memory_space<vmem>>, %arg4: memref<128x128xf32, #tpu.memory_space<vmem>>, %arg5: memref<8x16x16xf32, #tpu.memory_space<vmem>>, %arg6: memref<8x16x16xf32, #tpu.memory_space<vmem>>) attributes {dimension_semantics = [#tpu.dimension_semantics<parallel>, #tpu.dimension_semantics<parallel>, #tpu.dimension_semantics<parallel>], iteration_bounds = array<i64: 1, 1, 1>, scalar_prefetch = 0 : i64, scratch_operands = 0 : i64, tpu.core_type = #tpu.core_type<tc>, window_params = [{pipeline_mode = #tpu.pipeline_mode<synchronous>, transform_indices = @transform_0, window_bounds = array<i64: 16, 16>}, {pipeline_mode = #tpu.pipeline_mode<synchronous>, transform_indices = @transform_1, window_bounds = array<i64: 128, 128>}, {transform_indices = @transform_2, window_bounds = array<i64: 8, 16, 16>}, {transform_indices = @transform_3, window_bounds = array<i64: 8, 16, 16>}]} {
    %c0 = arith.constant 0 : index
    %c0_0 = arith.constant 0 : index
    %c0_1 = arith.constant 0 : index
    %0 = vector.load %arg5[%c0, %c0_0, %c0_1] : memref<8x16x16xf32, #tpu.memory_space<vmem>>, vector<8x16x16xf32>
    %1 = vector.shape_cast %0 : vector<8x16x16xf32> to vector<128x16xf32>
    %c0_2 = arith.constant 0 : index
    %c0_3 = arith.constant 0 : index
    %2 = vector.load %arg3[%c0_2, %c0_3] : memref<16x16xf32, #tpu.memory_space<vmem>>, vector<16x16xf32>
    %cst = arith.constant dense<0.000000e+00> : vector<128x16xf32>
    %3 = tpu.matmul %1, %2, %cst {dimension_numbers = #tpu.dot_dimension_numbers<[1], [0], [0], [1], [0, 0, 1, 1], [], []>} : vector<128x16xf32>, vector<16x16xf32>, vector<128x16xf32> -> vector<128x16xf32>
    %c0_4 = arith.constant 0 : index
    %c0_5 = arith.constant 0 : index
    %4 = vector.load %arg4[%c0_4, %c0_5] : memref<128x128xf32, #tpu.memory_space<vmem>>, vector<128x128xf32>
    %cst_6 = arith.constant dense<0.000000e+00> : vector<128x16xf32>
    %5 = tpu.matmul %4, %3, %cst_6 {dimension_numbers = #tpu.dot_dimension_numbers<[1], [0], [0], [1], [0, 0, 1, 1], [], []>} : vector<128x128xf32>, vector<128x16xf32>, vector<128x16xf32> -> vector<128x16xf32>
    %6 = vector.shape_cast %5 : vector<128x16xf32> to vector<8x16x16xf32>
    %c0_7 = arith.constant 0 : index
    %c0_8 = arith.constant 0 : index
    %c0_9 = arith.constant 0 : index
    %7 = vector.load %arg6[%c0_7, %c0_8, %c0_9] : memref<8x16x16xf32, #tpu.memory_space<vmem>>, vector<8x16x16xf32>
    tpu.vector_store %arg6[%c0_7, %c0_8, %c0_9], %6 {strides = array<i32>} : memref<8x16x16xf32, #tpu.memory_space<vmem>>, vector<8x16x16xf32>,
    return
  }
  func.func @transform_0(%arg0: i32, %arg1: i32, %arg2: i32) -> (i32, i32) {
    %c0_i32 = arith.constant 0 : i32
    %c0_i32_0 = arith.constant 0 : i32
    %c0_i32_1 = arith.constant 0 : i32
    return %c0_i32, %c0_i32_0 : i32, i32
  }
  func.func @transform_1(%arg0: i32, %arg1: i32, %arg2: i32) -> (i32, i32) {
    %c0_i32 = arith.constant 0 : i32
    %c0_i32_0 = arith.constant 0 : i32
    %c0_i32_1 = arith.constant 0 : i32
    return %c0_i32, %c0_i32_0 : i32, i32
  }
  func.func @transform_2(%arg0: i32, %arg1: i32, %arg2: i32) -> (i32, i32, i32) {
    %c0_i32 = arith.constant 0 : i32
    return %arg0, %arg1, %arg2 : i32, i32, i32
  }
  func.func @transform_3(%arg0: i32, %arg1: i32, %arg2: i32) -> (i32, i32, i32) {
    %c0_i32 = arith.constant 0 : i32
    return %arg0, %arg1, %arg2 : i32, i32, i32
  }
}

</mosaic_0001>

<bundles_post_ra>
// kernel: wav_packing.1
= control target key start
LH: loop header
LB: loop body
LE: loop exit
PB: predicated region body
PF: predicated region fallthrough
CT: control target
= control target key end

     0   :  { %8 = vsyncpa [#allocation3], 0  ;;  %s884_s0 = inlined_call_operand.hbm [shape: f32[16,16], index: 0, kind: input, shape index: {}]   ;;  %s885_s1 = inlined_call_operand.hbm [shape: f32[128,128], index: 1, kind: input, shape index: {}]   ;;  %s886_s2 = inlined_call_operand.hbm [shape: f32[8,16,16], index: 2, kind: input, shape index: {}]   ;;  %s887_s3 = inlined_call_operand.vmem [shape: f32[8,16,16], index: 3, kind: output, shape index: {}]  }
   0x1   :  { %9 = vsyncpa [#allocation5], 0  ;;  %s727_s12 = smov [#allocation4]   ;;  %s728_s14 = smov [#allocation2]  }
   0x2   :  { %s27_s13 = sshll.u32 %s727_s12, 4  ;;  %s15_s15 = sshll.u32 %s728_s14, 4  ;;  %s28_s13 = int_to_ptr.vmem [resolvable:$true] %s27_s13  ;;  %s752_s15 = int_to_ptr.vmem [resolvable:$true] %s15_s15 }
   0x3   :  { %s657_s18 = scalar_lea.hbm %s885_s1, 2048 }
   0x4   :  { %p658_p0 = scmp.ne.s32.totalorder %s885_s1, %s657_s18  ;;  %p661_p1 = scmp.lt.u32.totalorder %s657_s18, %s885_s1 }
   0x6   :  { %p663_p2 = pnand %p661_p1, %p658_p0 }
   0x8   :  { %666 = shalt.err (!%p663_p2)
}
   0x9   :  { %s667_s23 = scalar_lea.vmem %s28_s13, 2048  ;;  %p672_p4 = scmp.lt.s32.totalorder %s28_s13, %s28_s13 }
   0xa   :  { %p668_p3 = scmp.ne.s32.totalorder %s28_s13, %s667_s23  ;;  %p673_p5 = scmp.lt.s32.totalorder %s667_s23, %s667_s23 }
   0xc   :  { %p674_p6 = por %p673_p5, %p672_p4 }
   0xe   :  { %p675_p7 = pnand %p674_p6, %p668_p3 }
  0x10   :  { %678 = shalt.err (!%p675_p7)
}
  0x11   :  { %s729_s24 = smov 128   ;;  %s730_s25 = smov 8  }
  0x12   :  { %33 = dma.hbm_to_vmem [thread:$0]  %s885_s1, 2048, %s28_s13, [#allocation5], %s729_s24, %s729_s24, %s730_s25  }
  0x13   :  { %s679_s30 = scalar_lea.hbm %s884_s0, 256 }
  0x14   :  { %p680_p8 = scmp.ne.s32.totalorder %s884_s0, %s679_s30  ;;  %p683_p9 = scmp.lt.u32.totalorder %s679_s30, %s884_s0 }
  0x16   :  { %p685_p10 = pnand %p683_p9, %p680_p8 }
  0x18   :  { %688 = shalt.err (!%p685_p10)
}
  0x19   :  { %s689_s8 = scalar_lea.vmem %s752_s15, 256  ;;  %p694_p12 = scmp.lt.s32.totalorder %s752_s15, %s752_s15 }
  0x1a   :  { %p690_p11 = scmp.ne.s32.totalorder %s752_s15, %s689_s8  ;;  %p695_p13 = scmp.lt.s32.totalorder %s689_s8, %s689_s8 }
  0x1c   :  { %p696_p0 = por %p695_p13, %p694_p12 }
  0x1e   :  { %p697_p1 = pnand %p696_p0, %p690_p11 }
  0x20   :  { %700 = shalt.err (!%p697_p1)
}
  0x21   :  { %21 = dma.hbm_to_vmem [thread:$0]  %s884_s0, 256, %s752_s15, [#allocation3], %s729_s24, %s729_s24, %s730_s25  }
  0x22   :  { %s731_s10 = smov [#allocation6]   ;;  %s701_s14 = scalar_lea.hbm %s886_s2, 2048 }
  0x23   :  { %s39_s11 = sshll.u32 %s731_s10, 4  ;;  %p702_p2 = scmp.ne.s32.totalorder %s886_s2, %s701_s14  ;;  %s40_s11 = int_to_ptr.vmem [resolvable:$true] %s39_s11 }
  0x24   :  { %p705_p3 = scmp.lt.u32.totalorder %s701_s14, %s886_s2 }
  0x26   :  { %p707_p4 = pnand %p705_p3, %p702_p2 }
  0x28   :  { %710 = shalt.err (!%p707_p4)
}
  0x29   :  { %s711_s20 = scalar_lea.vmem %s40_s11, 2048  ;;  %p716_p6 = scmp.lt.s32.totalorder %s40_s11, %s40_s11 }
  0x2a   :  { %p712_p5 = scmp.ne.s32.totalorder %s40_s11, %s711_s20  ;;  %p717_p7 = scmp.lt.s32.totalorder %s711_s20, %s711_s20 }
  0x2c   :  { %p718_p8 = por %p717_p7, %p716_p6 }
  0x2e   :  { %p719_p9 = pnand %p718_p8, %p712_p5 }
  0x30   :  { %722 = shalt.err (!%p719_p9)
}
  0x31   :  { %45 = dma.hbm_to_vmem [thread:$0]  %s886_s2, 2048, %s40_s11, [#allocation5], %s729_s24, %s729_s24, %s730_s25  }
  0x32   :  { %723 = dma.done.wait [#allocation3], 256  }
  0x33   :  { %724 = vsyncadd [#allocation3], 4294967040 }
  0x34   :  { %725 = dma.done.wait [#allocation5], 4096  }
  0x35   :  { %726 = vsyncadd [#allocation5], 4294963200  ;;  %vm73_vm0 = vcmask 130048   ;;  %v71_v0 = vld [vmem:[#allocation2] sm:$0xff]  ;;  %v72_v1 = vld [vmem:[#allocation2 + $0x8] sm:$0xff] }
  0x36   :  { %v55_v2 = vld [vmem:[#allocation6] sm:$0xff]  ;;  %v600_v3 = vpack.c.bf16 %v72_v1, %v71_v0  ;;  %v56_v4 = vld [vmem:[#allocation6 + $0x8] sm:$0xff]  ;;  %v57_v5 = vld [vmem:[#allocation6 + $0x10] sm:$0xff] }
  0x37   :  { %520 = vmatprep.mubr.msk.f32.mxu0 %vm73_vm0, %v55_v2  ;;  %v58_v6 = vld [vmem:[#allocation6 + $0x18] sm:$0xff]  ;;  %v59_v7 = vld [vmem:[#allocation6 + $0x20] sm:$0xff]  ;;  %v60_v8 = vld [vmem:[#allocation6 + $0x28] sm:$0xff] }
  0x38   :  { %601 = vmatprep.subr.bf16.mxu0 %v600_v3  ;;  %v61_v9 = vld [vmem:[#allocation6 + $0x30] sm:$0xff]  ;;  %v62_v10 = vld [vmem:[#allocation6 + $0x38] sm:$0xff]  ;;  %v63_v11 = vld [vmem:[#allocation6 + $0x40] sm:$0xff] }
  0x39   :  { %603 = vmatpush3.bf16.msra.mxu0 %v600_v3  ;;  %v64_v12 = vld [vmem:[#allocation6 + $0x48] sm:$0xff]  ;;  %v65_v13 = vld [vmem:[#allocation6 + $0x50] sm:$0xff]  ;;  %v66_v14 = vld [vmem:[#allocation6 + $0x58] sm:$0xff] }
  0x3a   :  { %v67_v15 = vld [vmem:[#allocation6 + $0x60] sm:$0xff]  ;;  %v68_v16 = vld [vmem:[#allocation6 + $0x68] sm:$0xff]  ;;  %v69_v17 = vld [vmem:[#allocation6 + $0x70] sm:$0xff] }
  0x3b   :  { %v70_v18 = vld [vmem:[#allocation6 + $0x78] sm:$0xff]  ;;  %v273_v19 = vld [vmem:[#allocation4 + $0x30] sm:$0xff]  ;;  %v267_v20 = vld [vmem:[#allocation4] sm:$0xff] }
  0x3c   :  { %521 = vmatmul.mubr.msk.f32.vlgmr.msra.gmra.mrb[0].mxu0 %vm73_vm0, %v56_v4  ;;  %585 = vmatprep.mubr.f32.mxu1 %v273_v19  ;;  %v274_v45 = vld [vmem:[#allocation4 + $0x38] sm:$0xff]  ;;  %v268_v46 = vld [vmem:[#allocation4 + $0x8] sm:$0xff]  ;;  %v275_v47 = vld [vmem:[#allocation4 + $0x40] sm:$0xff] }
  0x3d   :  { %523 = vmatprep.mubr.msk.f32.mxu0 %vm73_vm0, %v57_v5  ;;  %v269_v48 = vld [vmem:[#allocation4 + $0x10] sm:$0xff]  ;;  %v276_v49 = vld [vmem:[#allocation4 + $0x48] sm:$0xff]  ;;  %v270_v50 = vld [vmem:[#allocation4 + $0x18] sm:$0xff] }
  0x3e   :  { %v277_v51 = vld [vmem:[#allocation4 + $0x50] sm:$0xff]  ;;  %v271_v52 = vld [vmem:[#allocation4 + $0x20] sm:$0xff]  ;;  %v278_v53 = vld [vmem:[#allocation4 + $0x58] sm:$0xff] }
  0x3f   :  { %v272_v54 = vld [vmem:[#allocation4 + $0x28] sm:$0xff]  ;;  %v279_v55 = vld [vmem:[#allocation4 + $0x60] sm:$0xff]  ;;  %v281_v57 = vld [vmem:[#allocation4 + $0x70] sm:$0xff] }
  0x40   :  { %524 = vmatmul.mubr.msk.f32.gmra.mrb[2].mxu0 %vm73_vm0, %v58_v6  ;;  %v280_v56 = vld [vmem:[#allocation4 + $0x68] sm:$0xff]  ;;  %v282_v58 = vld [vmem:[#allocation4 + $0x78] sm:$0xff] }
  0x41   :  { %526 = vmatprep.mubr.msk.f32.mxu0 %vm73_vm0, %v59_v7 }
  0x44   :  { %527 = vmatmul.mubr.msk.f32.gmra.mrb[4].mxu0 %vm73_vm0, %v60_v8 }
  0x45   :  { %529 = vmatprep.mubr.msk.f32.mxu0 %vm73_vm0, %v61_v9 }
  0x48   :  { %530 = vmatmul.mubr.msk.f32.gmra.mrb[6].mxu0 %vm73_vm0, %v62_v10 }
  0x49   :  { %532 = vmatprep.mubr.msk.f32.mxu0 %vm73_vm0, %v63_v11 }
  0x4c   :  { %533 = vmatmul.mubr.msk.f32.gmra.mrb[8].mxu0 %vm73_vm0, %v64_v12 }
  0x4d   :  { %535 = vmatprep.mubr.msk.f32.mxu0 %vm73_vm0, %v65_v13 }
  0x50   :  { %536 = vmatmul.mubr.msk.f32.gmra.mrb[10].mxu0 %vm73_vm0, %v66_v14 }
  0x51   :  { %538 = vmatprep.mubr.msk.f32.mxu0 %vm73_vm0, %v67_v15 }
  0x54   :  { %539 = vmatmul.mubr.msk.f32.gmra.mrb[12].mxu0 %vm73_vm0, %v68_v16 }
  0x55   :  { %541 = vmatprep.mubr.msk.f32.mxu0 %vm73_vm0, %v69_v17 }
  0x58   :  { %542 = vmatmul.mubr.msk.f32.gmra.mrb[14].mxu0 %vm73_vm0, %v70_v18 }
  0x59   :  { %576 = vmatprep.mubr.f32.mxu0 %v267_v20 }
 0x10f   :  { %v522_v21 = vpop.f32.mrb[0].mxu0 }
 0x110   :  { %v188_v22 = vpop.f32.mrb[1].mxu0 }
 0x111   :  { %v604_v23 = vpack.c.bf16 %v522_v21, %v188_v22 }
 0x113   :  { %v525_v24 = vpop.f32.mrb[2].mxu0  ;;  %605 = vmatprep.subr.bf16.mxu0 %v604_v23  ;;  %636 = vmatprep.subr.bf16.mxu1 %v604_v23 }
 0x114   :  { %v198_v25 = vpop.f32.mrb[3].mxu0  ;;  %607 = vmatpush3.bf16.msra.mxu0 %v604_v23  ;;  %644 = vmatpush3.bf16.msra.mxu1 %v604_v23 }
 0x115   :  { %v608_v26 = vpack.c.bf16 %v525_v24, %v198_v25 }
 0x117   :  { %v528_v27 = vpop.f32.mrb[4].mxu0  ;;  %609 = vmatprep.subr.bf16.mxu0 %v608_v26  ;;  %637 = vmatprep.subr.bf16.mxu1 %v608_v26 }
 0x118   :  { %v208_v28 = vpop.f32.mrb[5].mxu0  ;;  %611 = vmatpush3.bf16.msra.mxu0 %v608_v26  ;;  %645 = vmatpush3.bf16.msra.mxu1 %v608_v26 }
 0x119   :  { %v612_v29 = vpack.c.bf16 %v528_v27, %v208_v28 }
 0x11b   :  { %v531_v30 = vpop.f32.mrb[6].mxu0  ;;  %613 = vmatprep.subr.bf16.mxu0 %v612_v29  ;;  %638 = vmatprep.subr.bf16.mxu1 %v612_v29 }
 0x11c   :  { %v218_v31 = vpop.f32.mrb[7].mxu0  ;;  %615 = vmatpush3.bf16.msra.mxu0 %v612_v29  ;;  %646 = vmatpush3.bf16.msra.mxu1 %v612_v29 }
 0x11d   :  { %v616_v32 = vpack.c.bf16 %v531_v30, %v218_v31 }
 0x11f   :  { %v534_v33 = vpop.f32.mrb[8].mxu0  ;;  %617 = vmatprep.subr.bf16.mxu0 %v616_v32  ;;  %639 = vmatprep.subr.bf16.mxu1 %v616_v32 }
 0x120   :  { %v228_v34 = vpop.f32.mrb[9].mxu0  ;;  %619 = vmatpush3.bf16.msra.mxu0 %v616_v32  ;;  %647 = vmatpush3.bf16.msra.mxu1 %v616_v32 }
 0x121   :  { %v620_v35 = vpack.c.bf16 %v534_v33, %v228_v34 }
 0x123   :  { %v537_v36 = vpop.f32.mrb[10].mxu0  ;;  %621 = vmatprep.subr.bf16.mxu0 %v620_v35  ;;  %640 = vmatprep.subr.bf16.mxu1 %v620_v35 }
 0x124   :  { %v238_v37 = vpop.f32.mrb[11].mxu0  ;;  %623 = vmatpush3.bf16.msra.mxu0 %v620_v35  ;;  %648 = vmatpush3.bf16.msra.mxu1 %v620_v35 }
 0x125   :  { %v624_v38 = vpack.c.bf16 %v537_v36, %v238_v37 }
 0x127   :  { %v540_v39 = vpop.f32.mrb[12].mxu0  ;;  %625 = vmatprep.subr.bf16.mxu0 %v624_v38  ;;  %641 = vmatprep.subr.bf16.mxu1 %v624_v38 }
 0x128   :  { %v248_v40 = vpop.f32.mrb[13].mxu0  ;;  %627 = vmatpush3.bf16.msra.mxu0 %v624_v38  ;;  %649 = vmatpush3.bf16.msra.mxu1 %v624_v38 }
 0x129   :  { %v628_v41 = vpack.c.bf16 %v540_v39, %v248_v40 }
 0x12b   :  { %v543_v42 = vpop.f32.mrb[14].mxu0  ;;  %629 = vmatprep.subr.bf16.mxu0 %v628_v41  ;;  %642 = vmatprep.subr.bf16.mxu1 %v628_v41 }
 0x12c   :  { %v258_v43 = vpop.f32.mrb[15].mxu0  ;;  %631 = vmatpush3.bf16.msra.mxu0 %v628_v41  ;;  %650 = vmatpush3.bf16.msra.mxu1 %v628_v41 }
 0x12d   :  { %v632_v44 = vpack.c.bf16 %v543_v42, %v258_v43 }
 0x12f   :  { %633 = vmatprep.subr.bf16.mxu0 %v632_v44  ;;  %643 = vmatprep.subr.bf16.mxu1 %v632_v44 }
 0x130   :  { %635 = vmatpush3.bf16.msra.mxu0 %v632_v44  ;;  %651 = vmatpush3.bf16.msra.mxu1 %v632_v44 }
 0x133   :  { %586 = vmatmul.mubr.f32.vlgmr.msra.gmra.mrb[0].mxu1 %v274_v45  ;;  %577 = vmatmul.mubr.f32.vlgmr.msra.gmra.mrb[16].mxu0 %v268_v46 }
 0x134   :  { %588 = vmatprep.mubr.f32.mxu1 %v275_v47  ;;  %579 = vmatprep.mubr.f32.mxu0 %v269_v48 }
 0x137   :  { %589 = vmatmul.mubr.f32.gmra.mrb[2].mxu1 %v276_v49  ;;  %580 = vmatmul.mubr.f32.gmra.mrb[18].mxu0 %v270_v50 }
 0x138   :  { %591 = vmatprep.mubr.f32.mxu1 %v277_v51  ;;  %582 = vmatprep.mubr.f32.mxu0 %v271_v52 }
 0x13b   :  { %592 = vmatmul.mubr.f32.gmra.mrb[4].mxu1 %v278_v53  ;;  %583 = vmatmul.mubr.f32.gmra.mrb[20].mxu0 %v272_v54 }
 0x13c   :  { %594 = vmatprep.mubr.f32.mxu1 %v279_v55 }
 0x13f   :  { %595 = vmatmul.mubr.f32.gmra.mrb[6].mxu1 %v280_v56 }
 0x140   :  { %597 = vmatprep.mubr.f32.mxu1 %v281_v57 }
 0x143   :  { %598 = vmatmul.mubr.f32.gmra.mrb[8].mxu1 %v282_v58 }
 0x206   :  { %v587_v59 = vpop.f32.mrb[0].mxu1  ;;  %v578_v60 = vpop.f32.mrb[16].mxu0 }
 0x207   :  { %435 = vst.msk [vmem:[%s887_s3 + $0x38] sm:$0xff] %vm73_vm0, %v587_v59  ;;  %v379_v61 = vpop.f32.mrb[1].mxu1  ;;  %429 = vst.msk [vmem:[%s887_s3 + $0x8] sm:$0xff] %vm73_vm0, %v578_v60  ;;  %v349_v62 = vpop.f32.mrb[17].mxu0 }
 0x208   :  { %434 = vst.msk [vmem:[%s887_s3 + $0x30] sm:$0xff] %vm73_vm0, %v379_v61  ;;  %428 = vst.msk [vmem:[%s887_s3] sm:$0xff] %vm73_vm0, %v349_v62 }
 0x20a   :  { %v590_v63 = vpop.f32.mrb[2].mxu1  ;;  %v581_v0 = vpop.f32.mrb[18].mxu0 }
 0x20b   :  { %437 = vst.msk [vmem:[%s887_s3 + $0x48] sm:$0xff] %vm73_vm0, %v590_v63  ;;  %v389_v1 = vpop.f32.mrb[3].mxu1  ;;  %431 = vst.msk [vmem:[%s887_s3 + $0x18] sm:$0xff] %vm73_vm0, %v581_v0  ;;  %v359_v2 = vpop.f32.mrb[19].mxu0 }
 0x20c   :  { %436 = vst.msk [vmem:[%s887_s3 + $0x40] sm:$0xff] %vm73_vm0, %v389_v1  ;;  %430 = vst.msk [vmem:[%s887_s3 + $0x10] sm:$0xff] %vm73_vm0, %v359_v2 }
 0x20e   :  { %v593_v3 = vpop.f32.mrb[4].mxu1  ;;  %v584_v4 = vpop.f32.mrb[20].mxu0 }
 0x20f   :  { %439 = vst.msk [vmem:[%s887_s3 + $0x58] sm:$0xff] %vm73_vm0, %v593_v3  ;;  %v399_v5 = vpop.f32.mrb[5].mxu1  ;;  %433 = vst.msk [vmem:[%s887_s3 + $0x28] sm:$0xff] %vm73_vm0, %v584_v4  ;;  %v369_v6 = vpop.f32.mrb[21].mxu0 }
 0x210   :  { %438 = vst.msk [vmem:[%s887_s3 + $0x50] sm:$0xff] %vm73_vm0, %v399_v5  ;;  %432 = vst.msk [vmem:[%s887_s3 + $0x20] sm:$0xff] %vm73_vm0, %v369_v6 }
 0x212   :  { %v596_v7 = vpop.f32.mrb[6].mxu1 }
 0x213   :  { %441 = vst.msk [vmem:[%s887_s3 + $0x68] sm:$0xff] %vm73_vm0, %v596_v7  ;;  %v409_v8 = vpop.f32.mrb[7].mxu1 }
 0x214   :  { %440 = vst.msk [vmem:[%s887_s3 + $0x60] sm:$0xff] %vm73_vm0, %v409_v8 }
 0x216   :  { %v599_v9 = vpop.f32.mrb[8].mxu1 }
 0x217   :  { %443 = vst.msk [vmem:[%s887_s3 + $0x78] sm:$0xff] %vm73_vm0, %v599_v9  ;;  %v419_v10 = vpop.f32.mrb[9].mxu1 }
 0x218   :  { %442 = vst.msk [vmem:[%s887_s3 + $0x70] sm:$0xff] %vm73_vm0, %v419_v10 }
 0x219   :  { %448 = vsyncpa [#allocation3], 1 }
 0x21a   :  { %449 = vsyncpa [#allocation5], 1 }

</bundles_post_ra>
